<compile_context>
chip_gen: v6e
topology: v6e:2x2x1
jax: 0.10.0
libtpu: 0.0.40
codegen_flags: <defaults>
</compile_context>

<pallas_src>
import functools

import jax
import jax.numpy as jnp
from jax.experimental import pallas as pl
from jax.experimental.pallas import tpu as pltpu


def _round_up(x, m):
    return (x + m - 1) // m * m


def _device_kind():
    try:
        return jax.devices()[0].device_kind.lower()
    except Exception:
        return ""


def _default_act_dtype():
    kind = _device_kind()
    # bf16 tanh roughly doubles EUP throughput on v6e/v7x; v5e (and older)
    # have no bf16 EUP/VPU path, so stay in f32 there.
    if ("v6" in kind) or ("v7" in kind):
        return jnp.bfloat16
    return jnp.float32


def _default_min_steps():
    # v7x has 2 TensorCores per chip; the "parallel" batch axis shards across
    # them, so keep at least 2 grid steps whenever possible.
    return 2 if "v7" in _device_kind() else 1


def _fused_mlp_kernel(x_ref, w1_ref, b1_ref, w2_ref, b2_ref, out_ref, *, act_dtype):
    # x: (tb, 4); w1: (4, 128); w2: (128, 128) block-diagonal; biases: (1, 128)
    z1 = (
        jnp.dot(x_ref[...], w1_ref[...], preferred_element_type=jnp.float32)
        + b1_ref[...]
    )
    h = jnp.tanh(z1.astype(act_dtype))
    z2 = (
        jnp.dot(h, w2_ref[...], preferred_element_type=jnp.float32)
        + b2_ref[...]
    )
    y = jnp.tanh(z2.astype(act_dtype))
    out_ref[...] = y.astype(out_ref.dtype)


def fuse_params(params):
    """Precompute the fused 128-lane parameters ONCE (hoist out of forward)."""
    hid = int(params["pw2"].shape[1])
    w1 = jnp.concatenate([params["pw1"], params["vw1"]], axis=1)        # (4, 128)
    b1 = jnp.concatenate([params["pb1"], params["vb1"]], axis=1)        # (1, 128)
    zero = jnp.zeros((hid, hid), params["pw2"].dtype)
    w2 = jnp.concatenate(                                               # (128, 128)
        [jnp.concatenate([params["pw2"], zero], axis=1),
         jnp.concatenate([zero, params["vw2"]], axis=1)], axis=0)
    b2 = jnp.concatenate([params["pb2"], params["vb2"]], axis=1)        # (1, 128)
    return {"w1": w1, "b1": b1, "w2": w2, "b2": b2, "hid": hid}


def mlp_extractor(features, fused, *, tile_b=8192, out_dtype=jnp.float32,
                  act_dtype=None, min_grid_steps=None, return_fused=False):
    """features: (B, in_dim) float32; fused: output of fuse_params(params).

    Returns (latent_policy, latent_value), each (B, hid), in out_dtype
    (or the single fused (B, 2*hid) slab if return_fused=True).

    tile_b: batch rows per grid step (multiple of 8).  ~2 KiB of
    double-buffered VMEM per row at f32 output, so 8192 costs ~17 MiB -- well
    under physical VMEM on every chip; vmem_limit_bytes is raised accordingly
    (v5e's scoped default is only 16 MiB).
    """
    B, in_dim = features.shape
    hid = fused["hid"]
    width = 2 * hid  # fused lane width (128)

    if act_dtype is None:
        act_dtype = _default_act_dtype()
    if min_grid_steps is None:
        min_grid_steps = _default_min_steps()

    out_itemsize = jnp.dtype(out_dtype).itemsize

    # ---- batch tiling: balance rows across cdiv-derived steps --------------
    # (avoids the old round_up(B, tile_b) blow-up where B = tile_b + 8 padded
    #  to 2*tile_b of wasted compute + writeback)
    B8 = _round_up(B, 8)

    # Cap the tile so the double-buffered in+out blocks stay within ~48 MiB.
    per_row_bytes = 2 * (128 * 4 + 128 * out_itemsize)  # lane-padded in + out, x2 buffers
    max_tb = max(8, ((48 << 20) // per_row_bytes) // 8 * 8)
    tb_cap = min(_round_up(tile_b, 8), max_tb)

    n_steps = max(min_grid_steps, pl.cdiv(B8, tb_cap))
    tb = _round_up(pl.cdiv(B8, n_steps), 8)
    n_steps = max(pl.cdiv(B8, tb), min_grid_steps)
    Bp = n_steps * tb

    if Bp != B:
        features = jnp.pad(features, ((0, Bp - B), (0, 0)))
    grid = (n_steps,)

    # Scoped-VMEM limit: double-buffered blocks + resident weights + headroom.
    weight_bytes = 4 * (fused["w1"].size + fused["b1"].size
                        + fused["w2"].size + fused["b2"].size)
    vmem_bytes = per_row_bytes * tb + 2 * weight_bytes + (2 << 20)
    vmem_bytes = min(max(vmem_bytes, 16 << 20), 56 << 20)

    cost = pl.CostEstimate(
        flops=2 * Bp * (in_dim * width + width * width),
        transcendentals=2 * Bp * width,
        bytes_accessed=Bp * (in_dim * 4 + width * out_itemsize) + weight_bytes,
    )

    kernel = functools.partial(_fused_mlp_kernel, act_dtype=act_dtype)

    fused_out = pl.pallas_call(
        kernel,
        out_shape=jax.ShapeDtypeStruct((Bp, width), out_dtype),
        grid=grid,
        in_specs=[
            pl.BlockSpec((tb, in_dim), lambda i: (i, 0)),      # x: tiled over batch
            pl.BlockSpec((in_dim, width), lambda i: (0, 0)),   # W1: VMEM-resident
            pl.BlockSpec((1, width), lambda i: (0, 0)),        # b1
            pl.BlockSpec((width, width), lambda i: (0, 0)),    # W2 (block-diagonal)
            pl.BlockSpec((1, width), lambda i: (0, 0)),        # b2
        ],
        out_specs=pl.BlockSpec((tb, width), lambda i: (i, 0)),
        compiler_params=pltpu.CompilerParams(
            dimension_semantics=("parallel",),
            vmem_limit_bytes=vmem_bytes,
        ),
        cost_estimate=cost,
    )(features, fused["w1"], fused["b1"], fused["w2"], fused["b2"])

    if return_fused:
        # Lane-dense [policy | value] slab; consume slices downstream inside
        # one jit so they fuse into the next matmuls (no extra HBM copies).
        return fused_out[:B]

    # Under jit these slices fuse with consumers; for standalone mem-bound
    # (v5e) use return_fused=True instead.
    latent_pi = fused_out[:B, :hid]
    latent_vf = fused_out[:B, hid:]
    return latent_pi, latent_vf


def init_params(key, feature_dims=(4, 64, 64)):
    """Deterministic init mimicking nn.Linear default (uniform +- 1/sqrt(fan_in))."""
    params = {}
    names = [("pw1", "pb1"), ("pw2", "pb2"), ("vw1", "vb1"), ("vw2", "vb2")]
    dims = [(feature_dims[0], feature_dims[1]),
            (feature_dims[1], feature_dims[2]),
            (feature_dims[0], feature_dims[1]),
            (feature_dims[1], feature_dims[2])]
    keys = jax.random.split(key, len(names) * 2)
    for i, ((wn, bn), (fan_in, fan_out)) in enumerate(zip(names, dims)):
        bound = 1.0 / jnp.sqrt(fan_in)
        # stored as (in, out): kernel computes x @ W + b
        params[wn] = jax.random.uniform(
            keys[2 * i], (fan_in, fan_out), jnp.float32, -bound, bound)
        params[bn] = jax.random.uniform(
            keys[2 * i + 1], (1, fan_out), jnp.float32, -bound, bound)
    return params


def _reference(features, params):
    h = jnp.tanh(features @ params["pw1"] + params["pb1"])
    p = jnp.tanh(h @ params["pw2"] + params["pb2"])
    h = jnp.tanh(features @ params["vw1"] + params["vb1"])
    v = jnp.tanh(h @ params["vw2"] + params["vb2"])
    return p, v


if __name__ == "__main__":
    key = jax.random.PRNGKey(0)
    k_feat, k_param = jax.random.split(key)

    params = init_params(k_param)
    fused = fuse_params(params)  # hoisted: fuse once, reuse every forward

    # --- small batch, exact-precision path (f32 activations) ---------------
    batch = 8
    features = jax.random.normal(k_feat, (batch, 4), jnp.float32)
    latent_pi, latent_vf = mlp_extractor(features, fused, act_dtype=jnp.float32)
    jax.block_until_ready((latent_pi, latent_vf))

    ref_pi, ref_vf = _reference(features, params)
    assert latent_pi.shape == (batch, 64) and latent_vf.shape == (batch, 64)
    assert jnp.allclose(latent_pi, ref_pi, atol=1e-5, rtol=1e-5)
    assert jnp.allclose(latent_vf, ref_vf, atol=1e-5, rtol=1e-5)

    # --- default (auto) path: may use bf16 tanh on v6e/v7x ------------------
    pi2, vf2 = mlp_extractor(features, fused)
    jax.block_until_ready((pi2, vf2))
    tol = 1e-5 if _default_act_dtype() == jnp.float32 else 3e-2
    assert jnp.allclose(pi2, ref_pi, atol=tol, rtol=tol)
    assert jnp.allclose(vf2, ref_vf, atol=tol, rtol=tol)

    # --- non-multiple batch: exercises balanced padding + multi-step grid ---
    batch2 = 130
    features2 = jax.random.normal(jax.random.PRNGKey(1), (batch2, 4), jnp.float32)
    pi3, vf3 = mlp_extractor(features2, fused, act_dtype=jnp.float32,
                             min_grid_steps=2)
    jax.block_until_ready((pi3, vf3))
    ref_pi3, ref_vf3 = _reference(features2, params)
    assert pi3.shape == (batch2, 64) and vf3.shape == (batch2, 64)
    assert jnp.allclose(pi3, ref_pi3, atol=1e-5, rtol=1e-5)
    assert jnp.allclose(vf3, ref_vf3, atol=1e-5, rtol=1e-5)

    print("KERNEL_OK")
</pallas_src>

<mosaic_0001>
module attributes {stable_mosaic.version = 11 : i64} {
  func.func @_fused_mlp_kernel(%arg0: i32, %arg1: memref<8x4xf32, #tpu.memory_space<vmem>>, %arg2: memref<4x128xf32, #tpu.memory_space<vmem>>, %arg3: memref<1x128xf32, #tpu.memory_space<vmem>>, %arg4: memref<128x128xf32, #tpu.memory_space<vmem>>, %arg5: memref<1x128xf32, #tpu.memory_space<vmem>>, %arg6: memref<8x128xf32, #tpu.memory_space<vmem>>) attributes {dimension_semantics = [#tpu.dimension_semantics<parallel>], iteration_bounds = array<i64: 1>, scalar_prefetch = 0 : i64, scratch_operands = 0 : i64, tpu.core_type = #tpu.core_type<tc>, window_params = [{transform_indices = @transform_0, window_bounds = array<i64: 8, 4>}, {pipeline_mode = #tpu.pipeline_mode<synchronous>, transform_indices = @transform_1, window_bounds = array<i64: 4, 128>}, {pipeline_mode = #tpu.pipeline_mode<synchronous>, transform_indices = @transform_2, window_bounds = array<i64: 1, 128>}, {pipeline_mode = #tpu.pipeline_mode<synchronous>, transform_indices = @transform_3, window_bounds = array<i64: 128, 128>}, {pipeline_mode = #tpu.pipeline_mode<synchronous>, transform_indices = @transform_4, window_bounds = array<i64: 1, 128>}, {transform_indices = @transform_5, window_bounds = array<i64: 8, 128>}]} {
    %c0 = arith.constant 0 : index
    %c0_0 = arith.constant 0 : index
    %0 = vector.load %arg1[%c0, %c0_0] : memref<8x4xf32, #tpu.memory_space<vmem>>, vector<8x4xf32>
    %c0_1 = arith.constant 0 : index
    %c0_2 = arith.constant 0 : index
    %1 = vector.load %arg2[%c0_1, %c0_2] : memref<4x128xf32, #tpu.memory_space<vmem>>, vector<4x128xf32>
    %cst = arith.constant dense<0.000000e+00> : vector<8x128xf32>
    %2 = tpu.matmul %0, %1, %cst {dimension_numbers = #tpu.dot_dimension_numbers<[1], [0], [0], [1], [0, 0, 1, 1], [], []>} : vector<8x4xf32>, vector<4x128xf32>, vector<8x128xf32> -> vector<8x128xf32>
    %c0_3 = arith.constant 0 : index
    %c0_4 = arith.constant 0 : index
    %3 = vector.load %arg3[%c0_3, %c0_4] : memref<1x128xf32, #tpu.memory_space<vmem>>, vector<1x128xf32>
    %4 = vector.broadcast %3 : vector<1x128xf32> to vector<8x128xf32>
    %5 = arith.addf %2, %4 : vector<8x128xf32>
    %6 = math.tanh %5 : vector<8x128xf32>
    %c0_5 = arith.constant 0 : index
    %c0_6 = arith.constant 0 : index
    %7 = vector.load %arg4[%c0_5, %c0_6] : memref<128x128xf32, #tpu.memory_space<vmem>>, vector<128x128xf32>
    %cst_7 = arith.constant dense<0.000000e+00> : vector<8x128xf32>
    %8 = tpu.matmul %6, %7, %cst_7 {dimension_numbers = #tpu.dot_dimension_numbers<[1], [0], [0], [1], [0, 0, 1, 1], [], []>} : vector<8x128xf32>, vector<128x128xf32>, vector<8x128xf32> -> vector<8x128xf32>
    %c0_8 = arith.constant 0 : index
    %c0_9 = arith.constant 0 : index
    %9 = vector.load %arg5[%c0_8, %c0_9] : memref<1x128xf32, #tpu.memory_space<vmem>>, vector<1x128xf32>
    %10 = vector.broadcast %9 : vector<1x128xf32> to vector<8x128xf32>
    %11 = arith.addf %8, %10 : vector<8x128xf32>
    %12 = math.tanh %11 : vector<8x128xf32>
    %c0_10 = arith.constant 0 : index
    %c0_11 = arith.constant 0 : index
    %13 = vector.load %arg6[%c0_10, %c0_11] : memref<8x128xf32, #tpu.memory_space<vmem>>, vector<8x128xf32>
    tpu.vector_store %arg6[%c0_10, %c0_11], %12 {strides = array<i32>} : memref<8x128xf32, #tpu.memory_space<vmem>>, vector<8x128xf32>,
    return
  }
  func.func @transform_0(%arg0: i32) -> (i32, i32) {
    %c0_i32 = arith.constant 0 : i32
    %c0_i32_0 = arith.constant 0 : i32
    return %arg0, %c0_i32 : i32, i32
  }
  func.func @transform_1(%arg0: i32) -> (i32, i32) {
    %c0_i32 = arith.constant 0 : i32
    %c0_i32_0 = arith.constant 0 : i32
    %c0_i32_1 = arith.constant 0 : i32
    return %c0_i32, %c0_i32_0 : i32, i32
  }
  func.func @transform_2(%arg0: i32) -> (i32, i32) {
    %c0_i32 = arith.constant 0 : i32
    %c0_i32_0 = arith.constant 0 : i32
    %c0_i32_1 = arith.constant 0 : i32
    return %c0_i32, %c0_i32_0 : i32, i32
  }
  func.func @transform_3(%arg0: i32) -> (i32, i32) {
    %c0_i32 = arith.constant 0 : i32
    %c0_i32_0 = arith.constant 0 : i32
    %c0_i32_1 = arith.constant 0 : i32
    return %c0_i32, %c0_i32_0 : i32, i32
  }
  func.func @transform_4(%arg0: i32) -> (i32, i32) {
    %c0_i32 = arith.constant 0 : i32
    %c0_i32_0 = arith.constant 0 : i32
    %c0_i32_1 = arith.constant 0 : i32
    return %c0_i32, %c0_i32_0 : i32, i32
  }
  func.func @transform_5(%arg0: i32) -> (i32, i32) {
    %c0_i32 = arith.constant 0 : i32
    %c0_i32_0 = arith.constant 0 : i32
    return %arg0, %c0_i32 : i32, i32
  }
}

</mosaic_0001>

<bundles_post_ra>
// kernel: tpu_custom_call.1
= control target key start
LH: loop header
LB: loop body
LE: loop exit
PB: predicated region body
PF: predicated region fallthrough
CT: control target
= control target key end

     0   :  { %10 = vsyncpa [#allocation3], 0  ;;  %s404_s0 = inlined_call_operand.vmem [shape: f32[8,4], index: 0, kind: input, shape index: {}]   ;;  %s405_s1 = inlined_call_operand.vmem [shape: f32[4,128], index: 1, kind: input, shape index: {}]   ;;  %s406_s2 = inlined_call_operand.vmem [shape: f32[1,128], index: 2, kind: input, shape index: {}]   ;;  %s407_s3 = inlined_call_operand.hbm [shape: f32[128,128], index: 3, kind: input, shape index: {}]   ;;  %s408_s4 = inlined_call_operand.vmem [shape: f32[1,128], index: 4, kind: input, shape index: {}]   ;;  %s409_s5 = inlined_call_operand.hbm [shape: f32[8,128], index: 5, kind: output, shape index: {}]  }
   0x1   :  { %11 = vsyncpa [#allocation4], 0  ;;  %s350_s18 = smov [#allocation2]  }
   0x2   :  { %s23_s19 = sshll.u32 %s350_s18, 4  ;;  %s24_s19 = int_to_ptr.vmem [resolvable:$true] %s23_s19 }
   0x3   :  { %s314_s20 = scalar_lea.vmem %s24_s19, 2048  ;;  %p319_p1 = scmp.lt.s32.totalorder %s24_s19, %s24_s19 }
   0x4   :  { %p315_p0 = scmp.ne.s32.totalorder %s24_s19, %s314_s20  ;;  %p320_p2 = scmp.lt.s32.totalorder %s314_s20, %s314_s20 }
   0x6   :  { %p321_p3 = por %p320_p2, %p319_p1 }
   0x8   :  { %p322_p4 = pnand %p321_p3, %p315_p0 }
   0xa   :  { %325 = shalt.err (!%p322_p4)
}
   0xb   :  { %s351_s21 = smov 128   ;;  %s352_s22 = smov 8  }
   0xc   :  { %29 = dma.hbm_to_vmem [thread:$0]  %s407_s3, 2048, %s24_s19, [#allocation3], %s351_s21, %s351_s21, %s352_s22  }
   0xd   :  { %346 = dma.done.wait [#allocation3], 2048  }
   0xe   :  { %347 = vsyncadd [#allocation3], 4294965248  ;;  %v353_v0 = vmov 0.0   ;;  %vm354_vm0 = vmmov 0   ;;  %vm48_vm1 = vcmask 1043456   ;;  %vm44_vm2 = vcmask 31744  }
   0xf   :  { %256 = vmatprep.subr.mxu0 %v353_v0  ;;  %258 = vmatprep.mubr.msk.f32.mxu0 %vm354_vm0, %v353_v0  ;;  %v36_v1 = vld [vmem:[%s405_s1] sm:$0xf]  ;;  %v138_v3 = vld [vmem:[#allocation2 + $0x78] sm:$0xff]  ;;  %v137_v4 = vld [vmem:[#allocation2 + $0x70] sm:$0xff]  ;;  %s355_s30 = smov [#allocation5]  }
  0x10   :  { %261 = vmatprep.subr.mxu1 %v353_v0  ;;  %293 = vmatprep.mubr.msk.f32.mxu1 %vm354_vm0, %v353_v0  ;;  %v35_v2 = vld [vmem:[%s404_s0] sm:$0xff]  ;;  %v136_v5 = vld [vmem:[#allocation2 + $0x68] sm:$0xff]  ;;  %v134_v7 = vld [vmem:[#allocation2 + $0x58] sm:$0xff]  ;;  %s224_s6 = sshll.u32 %s355_s30, 4  ;;  %s225_s6 = int_to_ptr.vmem [resolvable:$true] %s224_s6 }
  0x11   :  { %257 = vmatpush3.msk.msra.mxu0 %vm48_vm1, %v36_v1  ;;  %262 = vmatpush3.msra.mxu1 %v138_v3  ;;  %v135_v6 = vld [vmem:[#allocation2 + $0x60] sm:$0xff]  ;;  %v133_v8 = vld [vmem:[#allocation2 + $0x50] sm:$0xff]  ;;  %v132_v9 = vld [vmem:[#allocation2 + $0x48] sm:$0xff]  ;;  %p331_p6 = scmp.lt.s32.totalorder %s225_s6, %s225_s6 }
  0x12   :  { %259 = vmatmul.mubr.msk.f32.vlgmr.msra.gmra.mxu0 %vm44_vm2, %v35_v2  ;;  %263 = vmatprep.subr.mxu1 %v353_v0  ;;  %v131_v10 = vld [vmem:[#allocation2 + $0x40] sm:$0xff]  ;;  %v130_v11 = vld [vmem:[#allocation2 + $0x38] sm:$0xff]  ;;  %v129_v12 = vld [vmem:[#allocation2 + $0x30] sm:$0xff] }
  0x13   :  { %264 = vmatpush3.msra.mxu1 %v137_v4  ;;  %v128_v13 = vld [vmem:[#allocation2 + $0x28] sm:$0xff]  ;;  %v127_v14 = vld [vmem:[#allocation2 + $0x20] sm:$0xff]  ;;  %v126_v15 = vld [vmem:[#allocation2 + $0x18] sm:$0xff] }
  0x14   :  { %265 = vmatprep.subr.mxu1 %v353_v0  ;;  %v125_v16 = vld [vmem:[#allocation2 + $0x10] sm:$0xff]  ;;  %v124_v17 = vld [vmem:[#allocation2 + $0x8] sm:$0xff]  ;;  %v123_v18 = vld [vmem:[#allocation2] sm:$0xff] }
  0x15   :  { %266 = vmatpush3.msra.mxu1 %v136_v5  ;;  %v233_v19 = vld [vmem:[%s406_s2] ss:$0 sm:$0xff]  ;;  %s326_s2 = scalar_lea.vmem %s225_s6, 128 }
  0x16   :  { %267 = vmatprep.subr.mxu1 %v353_v0  ;;  %v236_v24 = vld [vmem:[%s408_s4] ss:$0 sm:$0xff]  ;;  %p327_p5 = scmp.ne.s32.totalorder %s225_s6, %s326_s2  ;;  %p332_p7 = scmp.lt.s32.totalorder %s326_s2, %s326_s2 }
  0x17   :  { %268 = vmatpush3.msra.mxu1 %v135_v6 }
  0x18   :  { %269 = vmatprep.subr.mxu1 %v353_v0  ;;  %p333_p8 = por %p332_p7, %p331_p6 }
  0x19   :  { %270 = vmatpush3.msra.mxu1 %v134_v7 }
  0x1a   :  { %271 = vmatprep.subr.mxu1 %v353_v0  ;;  %p334_p9 = pnand %p333_p8, %p327_p5 }
  0x1b   :  { %272 = vmatpush3.msra.mxu1 %v133_v8 }
  0x1c   :  { %273 = vmatprep.subr.mxu1 %v353_v0 }
  0x1d   :  { %274 = vmatpush3.msra.mxu1 %v132_v9 }
  0x1e   :  { %275 = vmatprep.subr.mxu1 %v353_v0 }
  0x1f   :  { %276 = vmatpush3.msra.mxu1 %v131_v10 }
  0x20   :  { %277 = vmatprep.subr.mxu1 %v353_v0 }
  0x21   :  { %278 = vmatpush3.msra.mxu1 %v130_v11 }
  0x22   :  { %279 = vmatprep.subr.mxu1 %v353_v0 }
  0x23   :  { %280 = vmatpush3.msra.mxu1 %v129_v12 }
  0x24   :  { %281 = vmatprep.subr.mxu1 %v353_v0 }
  0x25   :  { %282 = vmatpush3.msra.mxu1 %v128_v13 }
  0x26   :  { %283 = vmatprep.subr.mxu1 %v353_v0 }
  0x27   :  { %284 = vmatpush3.msra.mxu1 %v127_v14 }
  0x28   :  { %285 = vmatprep.subr.mxu1 %v353_v0 }
  0x29   :  { %286 = vmatpush3.msra.mxu1 %v126_v15 }
  0x2a   :  { %287 = vmatprep.subr.mxu1 %v353_v0 }
  0x2b   :  { %288 = vmatpush3.msra.mxu1 %v125_v16 }
  0x2c   :  { %289 = vmatprep.subr.mxu1 %v353_v0 }
  0x2d   :  { %290 = vmatpush3.msra.mxu1 %v124_v17 }
  0x2e   :  { %291 = vmatprep.subr.mxu1 %v353_v0 }
  0x2f   :  { %292 = vmatpush3.msra.mxu1 %v123_v18 }
  0xd2   :  { %v118_v20 = vpop.f32.mrf.mxu0 }
  0xd3   :  { %v119_v21 = vadd.f32 %v233_v19, %v118_v20 }
  0xd4   :  { %v260_v22 = vpop.f32.mrf.mxu0 }
  0xd5   :  { %302 = vtanh.f32 %v119_v21 }
  0xe2   :  { %v303_v23 = vpop.eup %302 }
  0xe3   :  { %294 = vmatmul.mubr.f32.vlgmr.msra.gmra.mxu1 %v303_v23 }
 0x1a3   :  { %v212_v25 = vpop.f32.mrf.mxu1 }
 0x1a4   :  { %v213_v26 = vadd.f32 %v236_v24, %v212_v25 }
 0x1a5   :  { %v295_v27 = vpop.f32.mrf.mxu1 }
 0x1a6   :  { %304 = vtanh.f32 %v213_v26 }
 0x1b3   :  { %v305_v28 = vpop.eup %304 }
 0x1b4   :  { %217 = vst [vmem:[#allocation5] sm:$0xff] %v305_v28 }
 0x1b5   :  { %337 = shalt.err (!%p334_p9)
}
 0x1b6   :  { %227 = dma.vmem_to_hbm [thread:$0]  %s225_s6, 128, %s409_s5, [#allocation4]  }
 0x1b7   :  { %348 = dma.done.wait [#allocation4], 128  }
 0x1b8   :  { %349 = vsyncadd [#allocation4], 4294967168 }
 0x1b9   :  { %231 = vsyncpa [#allocation3], 1 }
 0x1ba   :  { %232 = vsyncpa [#allocation4], 1 }

</bundles_post_ra>
